<compile_context>
chip_gen: v6e
topology: v6e:2x2x1
jax: 0.10.0
libtpu: 0.0.40
codegen_flags: <defaults>
</compile_context>

<pallas_src>
import jax
import jax.numpy as jnp
from jax.experimental import pallas as pl
from jax.experimental.pallas import tpu as pltpu

GNN_HIDDEN = 64
TARGET_FV_DIM = 17


# ------------------------- fused per-year kernel --------------------------- #

def choicenet_year_kernel(
    feat_ref, a_ref, zfeat_ref, true_ref,
    w1l_ref, b1l_ref, w1r_ref, b1r_ref,
    w2l_ref, b2l_ref, w2r_ref, b2r_ref,
    wp1_ref, bp1_ref, wp2_ref, bp2_ref,
    wt1_ref, bt1_ref, wt2_ref, bt2_ref,
    loss_ref,
):
    """One grid step == one year: 2x GraphSage -> post_mp -> transform -> BCE."""
    f32 = jnp.float32
    bf16 = jnp.bfloat16

    x = feat_ref[...]          # [N, F]  bf16
    a = a_ref[...]             # [N, N]  bf16 row-normalized mean adjacency
    t = true_ref[...]          # [K, N]  f32

    def linear(h_bf, w_ref, b_ref, relu):
        y = jnp.dot(h_bf, w_ref[...], preferred_element_type=f32) + b_ref[...]
        return jnp.maximum(y, 0.0) if relu else y

    def sage(h_bf, wl_ref, bl_ref, wr_ref, br_ref):
        # scatter(..., reduce='mean') expressed as dense A_mean @ h (MXU).
        prop = jnp.dot(a, h_bf, preferred_element_type=f32).astype(bf16)
        out = (jnp.dot(h_bf, wl_ref[...], preferred_element_type=f32) + bl_ref[...]
               + jnp.dot(prop, wr_ref[...], preferred_element_type=f32) + br_ref[...])
        # F.normalize(out, p=2, dim=-1, eps=1e-12) via rsqrt (EUP slot).
        ss = jnp.sum(out * out, axis=-1, keepdims=True)
        out = out * jax.lax.rsqrt(jnp.maximum(ss, 1e-24))
        # ReLU applied by GNN_Stack (dropout == identity here).
        return jnp.maximum(out, 0.0)

    # --- GNN stack (emb=True) ---------------------------------------------- #
    h = sage(x, w1l_ref, b1l_ref, w1r_ref, b1r_ref)                 # [N, 64]
    h = sage(h.astype(bf16), w2l_ref, b2l_ref, w2r_ref, b2r_ref)    # [N, 64]
    h = linear(h.astype(bf16), wp1_ref, bp1_ref, relu=False)        # [N, 64]
    z_vt = linear(h.astype(bf16), wp2_ref, bp2_ref, relu=False)     # [N, Z]

    # --- transform MLP on gathered firm embeddings --------------------------- #
    zf = zfeat_ref[...]                                             # [K, 16] bf16
    g = linear(zf, wt1_ref, bt1_ref, relu=True)                     # [K, 64]
    z_dt = linear(g.astype(bf16), wt2_ref, bt2_ref, relu=False)     # [K, Z]

    # --- logits + BCE -------------------------------------------------------- #
    logits = jax.lax.dot_general(
        z_dt.astype(bf16), z_vt.astype(bf16),
        (((1,), (1,)), ((), ())),
        preferred_element_type=f32)                                 # [K, N]
    p = jax.nn.sigmoid(logits)
    # torch.binary_cross_entropy clamps log terms at -100
    log_p = jnp.maximum(jnp.log(p), -100.0)
    log_1mp = jnp.maximum(jnp.log1p(-p), -100.0)
    bce = -(t * log_p + (1.0 - t) * log_1mp)
    loss = jnp.sum(bce) * (1.0 / float(bce.shape[0] * bce.shape[1]))

    # Lane-dense scalar writeback: broadcast into one (8, 128) tile.
    loss_ref[...] = jnp.broadcast_to(loss.astype(f32), loss_ref.shape)


# ------------------------------ wrapper ------------------------------------ #

def choicenet_fused(params, feats, adjs, zfeats, trues):
    """feats [Y,N,F] bf16, adjs [Y,N,N] bf16, zfeats [Y,K,Db+Dc] bf16,
    trues [Y,K,N] f32  ->  per-year losses [Y] f32."""
    Y, N, F = feats.shape
    K = trues.shape[1]
    Dz = zfeats.shape[2]

    # Per-year inputs: leading (year) dim squeezed out of the kernel view.
    year_specs = [
        pl.BlockSpec((None, N, F), lambda y: (y, 0, 0)),
        pl.BlockSpec((None, N, N), lambda y: (y, 0, 0)),
        pl.BlockSpec((None, K, Dz), lambda y: (y, 0, 0)),
        pl.BlockSpec((None, K, N), lambda y: (y, 0, 0)),
    ]

    # Weights: constant index_map -> resident across grid steps.
    w_args, w_specs = [], []
    for name in ["sage1_l", "sage1_r", "sage2_l", "sage2_r",
                 "post1", "post2", "trans1", "trans2"]:
        w, b = params[name]
        w = w.astype(jnp.bfloat16)
        b = b.reshape(1, -1).astype(jnp.float32)
        w_args += [w, b]
        w_specs += [pl.BlockSpec(w.shape, lambda y: (0, 0)),
                    pl.BlockSpec(b.shape, lambda y: (0, 0))]

    out = pl.pallas_call(
        choicenet_year_kernel,
        out_shape=jax.ShapeDtypeStruct((Y, 8, 128), jnp.float32),
        grid_spec=pltpu.PrefetchScalarGridSpec(
            num_scalar_prefetch=0,
            grid=(Y,),
            in_specs=year_specs + w_specs,
            out_specs=pl.BlockSpec((None, 8, 128), lambda y: (y, 0, 0)),
        ),
        compiler_params=pltpu.CompilerParams(
            dimension_semantics=("parallel",)),   # years shard across TCs (v7x)
    )(feats, adjs, zfeats, trues, *w_args)

    return out[:, 0, 0]


# ------------------------------ model glue ---------------------------------- #

def _init_linear(key, din, dout):
    kw, kb = jax.random.split(key)
    w = jax.random.normal(kw, (din, dout), jnp.float32) / jnp.sqrt(float(din))
    b = jax.random.normal(kb, (dout,), jnp.float32) * 0.01
    return w, b


def init_choicenet_params(key, emb_b, emb_c, emb_z):
    ks = jax.random.split(key, 8)
    return {
        # GNN_Stack('GraphSage'), 2 layers, heads=1
        "sage1_l": _init_linear(ks[0], TARGET_FV_DIM, GNN_HIDDEN),
        "sage1_r": _init_linear(ks[1], TARGET_FV_DIM, GNN_HIDDEN),
        "sage2_l": _init_linear(ks[2], GNN_HIDDEN, GNN_HIDDEN),
        "sage2_r": _init_linear(ks[3], GNN_HIDDEN, GNN_HIDDEN),
        # post_mp: Linear -> Dropout -> Linear
        "post1": _init_linear(ks[4], GNN_HIDDEN, GNN_HIDDEN),
        "post2": _init_linear(ks[5], GNN_HIDDEN, emb_z),
        # transform: Linear -> Dropout -> ReLU -> Linear
        "trans1": _init_linear(ks[6], emb_b + emb_c, GNN_HIDDEN),
        "trans2": _init_linear(ks[7], GNN_HIDDEN, emb_z),
    }


def _mean_adjacency(edge_index, num_nodes):
    """Row i of A = mean over source nodes j of edges (j -> i)."""
    src, dst = edge_index[0], edge_index[1]
    a = jnp.zeros((num_nodes, num_nodes), jnp.float32).at[dst, src].add(1.0)
    deg = a.sum(axis=1, keepdims=True)
    return a / jnp.where(deg > 0, deg, 1.0)


def choicenet_forward(params, mat_b, mat_c, choice_data_dict, s_year, e_year):
    dict_idx, true_tar_idxs, features, edges = choice_data_dict
    feats, adjs, zfeats, trues = [], [], [], []
    for year in range(s_year, e_year + 1):
        b_idx, c_idx = dict_idx[year]
        if b_idx.shape[0] == 0:           # original: skip years with no events
            continue
        n = features[year].shape[0]
        feats.append(features[year])                              # [N, 17]
        adjs.append(_mean_adjacency(edges[year], n))              # [N, N]
        zb = mat_b[0, b_idx, :]                                   # index_select(mat_b, 1, idx)
        zc = mat_c[0, c_idx, :]
        zfeats.append(jnp.concatenate([zb, zc], axis=-1))         # [K, Db+Dc]
        trues.append(true_tar_idxs[year].astype(jnp.float32))     # [K, N]

    feats = jnp.stack(feats).astype(jnp.bfloat16)
    adjs = jnp.stack(adjs).astype(jnp.bfloat16)
    zfeats = jnp.stack(zfeats).astype(jnp.bfloat16)
    trues = jnp.stack(trues)

    per_year = choicenet_fused(params, feats, adjs, zfeats, trues)
    return per_year.sum()


# ------------------------------ main ---------------------------------------- #

if __name__ == "__main__":
    emb_b, emb_c, emb_z = 8, 8, 16
    root = jax.random.PRNGKey(0)
    kp, kd = jax.random.split(root)
    params = init_choicenet_params(kp, emb_b, emb_c, emb_z)

    n_firms = 10       # columns of mat_b / mat_c
    n_nodes = 12       # graph nodes per year
    n_edges = 24       # edges per year
    k_events = 5       # self events per year
    s_year, e_year = 0, 1

    k1, k2, k3 = jax.random.split(kd, 3)
    mat_b = jax.random.normal(k1, (1, n_firms, emb_b), jnp.float32)
    mat_c = jax.random.normal(k2, (1, n_firms, emb_c), jnp.float32)

    dict_idx, true_tar, feats_l, edge_list = [], [], [], []
    for ky in jax.random.split(k3, e_year - s_year + 1):
        ka, kb, kc, kd2, ke = jax.random.split(ky, 5)
        dict_idx.append((jax.random.randint(ka, (k_events,), 0, n_firms),
                         jax.random.randint(kb, (k_events,), 0, n_firms)))
        true_tar.append((jax.random.uniform(kc, (k_events, n_nodes)) > 0.8)
                        .astype(jnp.float32))
        feats_l.append(jax.random.normal(kd2, (n_nodes, TARGET_FV_DIM), jnp.float32))
        edge_list.append(jax.random.randint(ke, (2, n_edges), 0, n_nodes))

    choice_data = (dict_idx, true_tar, feats_l, edge_list)
    loss = choicenet_forward(params, mat_b, mat_c, choice_data, s_year, e_year)
    jax.block_until_ready(loss)
    assert loss.shape == () and jnp.isfinite(loss)
    print("KERNEL_OK")
</pallas_src>

<mosaic_0001>
module attributes {stable_mosaic.version = 11 : i64} {
  func.func @choicenet_year_kernel(%arg0: i32, %arg1: memref<1x12x17xbf16, #tpu.memory_space<vmem>>, %arg2: memref<1x12x12xbf16, #tpu.memory_space<vmem>>, %arg3: memref<1x5x16xbf16, #tpu.memory_space<vmem>>, %arg4: memref<1x5x12xf32, #tpu.memory_space<vmem>>, %arg5: memref<17x64xbf16, #tpu.memory_space<vmem>>, %arg6: memref<1x64xf32, #tpu.memory_space<vmem>>, %arg7: memref<17x64xbf16, #tpu.memory_space<vmem>>, %arg8: memref<1x64xf32, #tpu.memory_space<vmem>>, %arg9: memref<64x64xbf16, #tpu.memory_space<vmem>>, %arg10: memref<1x64xf32, #tpu.memory_space<vmem>>, %arg11: memref<64x64xbf16, #tpu.memory_space<vmem>>, %arg12: memref<1x64xf32, #tpu.memory_space<vmem>>, %arg13: memref<64x64xbf16, #tpu.memory_space<vmem>>, %arg14: memref<1x64xf32, #tpu.memory_space<vmem>>, %arg15: memref<64x16xbf16, #tpu.memory_space<vmem>>, %arg16: memref<1x16xf32, #tpu.memory_space<vmem>>, %arg17: memref<16x64xbf16, #tpu.memory_space<vmem>>, %arg18: memref<1x64xf32, #tpu.memory_space<vmem>>, %arg19: memref<64x16xbf16, #tpu.memory_space<vmem>>, %arg20: memref<1x16xf32, #tpu.memory_space<vmem>>, %arg21: memref<1x8x128xf32, #tpu.memory_space<vmem>>) attributes {dimension_semantics = [#tpu.dimension_semantics<parallel>], iteration_bounds = array<i64: 2>, scalar_prefetch = 0 : i64, scratch_operands = 0 : i64, tpu.core_type = #tpu.core_type<tc>, window_params = [{transform_indices = @transform_0, window_bounds = array<i64: 1, 12, 17>}, {transform_indices = @transform_1, window_bounds = array<i64: 1, 12, 12>}, {transform_indices = @transform_2, window_bounds = array<i64: 1, 5, 16>}, {transform_indices = @transform_3, window_bounds = array<i64: 1, 5, 12>}, {pipeline_mode = #tpu.pipeline_mode<synchronous>, transform_indices = @transform_4, window_bounds = array<i64: 17, 64>}, {pipeline_mode = #tpu.pipeline_mode<synchronous>, transform_indices = @transform_5, window_bounds = array<i64: 1, 64>}, {pipeline_mode = #tpu.pipeline_mode<synchronous>, transform_indices = @transform_6, window_bounds = array<i64: 17, 64>}, {pipeline_mode = #tpu.pipeline_mode<synchronous>, transform_indices = @transform_7, window_bounds = array<i64: 1, 64>}, {pipeline_mode = #tpu.pipeline_mode<synchronous>, transform_indices = @transform_8, window_bounds = array<i64: 64, 64>}, {pipeline_mode = #tpu.pipeline_mode<synchronous>, transform_indices = @transform_9, window_bounds = array<i64: 1, 64>}, {pipeline_mode = #tpu.pipeline_mode<synchronous>, transform_indices = @transform_10, window_bounds = array<i64: 64, 64>}, {pipeline_mode = #tpu.pipeline_mode<synchronous>, transform_indices = @transform_11, window_bounds = array<i64: 1, 64>}, {pipeline_mode = #tpu.pipeline_mode<synchronous>, transform_indices = @transform_12, window_bounds = array<i64: 64, 64>}, {pipeline_mode = #tpu.pipeline_mode<synchronous>, transform_indices = @transform_13, window_bounds = array<i64: 1, 64>}, {pipeline_mode = #tpu.pipeline_mode<synchronous>, transform_indices = @transform_14, window_bounds = array<i64: 64, 16>}, {pipeline_mode = #tpu.pipeline_mode<synchronous>, transform_indices = @transform_15, window_bounds = array<i64: 1, 16>}, {pipeline_mode = #tpu.pipeline_mode<synchronous>, transform_indices = @transform_16, window_bounds = array<i64: 16, 64>}, {pipeline_mode = #tpu.pipeline_mode<synchronous>, transform_indices = @transform_17, window_bounds = array<i64: 1, 64>}, {pipeline_mode = #tpu.pipeline_mode<synchronous>, transform_indices = @transform_18, window_bounds = array<i64: 64, 16>}, {pipeline_mode = #tpu.pipeline_mode<synchronous>, transform_indices = @transform_19, window_bounds = array<i64: 1, 16>}, {transform_indices = @transform_20, window_bounds = array<i64: 1, 8, 128>}]} {
    %c0 = arith.constant 0 : index
    %c0_0 = arith.constant 0 : index
    %c0_1 = arith.constant 0 : index
    %0 = vector.load %arg1[%c0, %c0_0, %c0_1] : memref<1x12x17xbf16, #tpu.memory_space<vmem>>, vector<1x12x17xbf16>
    %1 = vector.shape_cast %0 : vector<1x12x17xbf16> to vector<12x17xbf16>
    %c0_2 = arith.constant 0 : index
    %c0_3 = arith.constant 0 : index
    %c0_4 = arith.constant 0 : index
    %2 = vector.load %arg2[%c0_2, %c0_3, %c0_4] : memref<1x12x12xbf16, #tpu.memory_space<vmem>>, vector<1x12x12xbf16>
    %3 = vector.shape_cast %2 : vector<1x12x12xbf16> to vector<12x12xbf16>
    %c0_5 = arith.constant 0 : index
    %c0_6 = arith.constant 0 : index
    %c0_7 = arith.constant 0 : index
    %4 = vector.load %arg4[%c0_5, %c0_6, %c0_7] : memref<1x5x12xf32, #tpu.memory_space<vmem>>, vector<1x5x12xf32>
    %5 = vector.shape_cast %4 : vector<1x5x12xf32> to vector<5x12xf32>
    %cst = arith.constant dense<0.000000e+00> : vector<12x17xf32>
    %6 = tpu.matmul %3, %1, %cst {dimension_numbers = #tpu.dot_dimension_numbers<[1], [0], [0], [1], [0, 0, 1, 1], [], []>} : vector<12x12xbf16>, vector<12x17xbf16>, vector<12x17xf32> -> vector<12x17xf32>
    %7 = arith.truncf %6 : vector<12x17xf32> to vector<12x17xbf16>
    %c0_8 = arith.constant 0 : index
    %c0_9 = arith.constant 0 : index
    %8 = vector.load %arg5[%c0_8, %c0_9] : memref<17x64xbf16, #tpu.memory_space<vmem>>, vector<17x64xbf16>
    %cst_10 = arith.constant dense<0.000000e+00> : vector<12x64xf32>
    %9 = tpu.matmul %1, %8, %cst_10 {dimension_numbers = #tpu.dot_dimension_numbers<[1], [0], [0], [1], [0, 0, 1, 1], [], []>} : vector<12x17xbf16>, vector<17x64xbf16>, vector<12x64xf32> -> vector<12x64xf32>
    %c0_11 = arith.constant 0 : index
    %c0_12 = arith.constant 0 : index
    %10 = vector.load %arg6[%c0_11, %c0_12] : memref<1x64xf32, #tpu.memory_space<vmem>>, vector<1x64xf32>
    %11 = vector.broadcast %10 : vector<1x64xf32> to vector<12x64xf32>
    %12 = arith.addf %9, %11 : vector<12x64xf32>
    %c0_13 = arith.constant 0 : index
    %c0_14 = arith.constant 0 : index
    %13 = vector.load %arg7[%c0_13, %c0_14] : memref<17x64xbf16, #tpu.memory_space<vmem>>, vector<17x64xbf16>
    %cst_15 = arith.constant dense<0.000000e+00> : vector<12x64xf32>
    %14 = tpu.matmul %7, %13, %cst_15 {dimension_numbers = #tpu.dot_dimension_numbers<[1], [0], [0], [1], [0, 0, 1, 1], [], []>} : vector<12x17xbf16>, vector<17x64xbf16>, vector<12x64xf32> -> vector<12x64xf32>
    %15 = arith.addf %12, %14 : vector<12x64xf32>
    %c0_16 = arith.constant 0 : index
    %c0_17 = arith.constant 0 : index
    %16 = vector.load %arg8[%c0_16, %c0_17] : memref<1x64xf32, #tpu.memory_space<vmem>>, vector<1x64xf32>
    %17 = vector.broadcast %16 : vector<1x64xf32> to vector<12x64xf32>
    %18 = arith.addf %15, %17 : vector<12x64xf32>
    %19 = arith.mulf %18, %18 : vector<12x64xf32>
    %cst_18 = arith.constant dense<0.000000e+00> : vector<12xf32>
    %20 = vector.multi_reduction <add>, %19, %cst_18 [1] : vector<12x64xf32> to vector<12xf32>
    %21 = vector.shape_cast %20 : vector<12xf32> to vector<12x1xf32>
    %cst_19 = arith.constant 1.000000e-24 : f32
    %22 = vector.broadcast %cst_19 : f32 to vector<12x1xf32>
    %23 = arith.maximumf %21, %22 : vector<12x1xf32>
    %24 = math.rsqrt %23 : vector<12x1xf32>
    %25 = vector.broadcast %24 : vector<12x1xf32> to vector<12x64xf32>
    %26 = arith.mulf %18, %25 : vector<12x64xf32>
    %cst_20 = arith.constant 0.000000e+00 : f32
    %27 = vector.broadcast %cst_20 : f32 to vector<12x64xf32>
    %28 = arith.maximumf %26, %27 : vector<12x64xf32>
    %29 = arith.truncf %28 : vector<12x64xf32> to vector<12x64xbf16>
    %cst_21 = arith.constant dense<0.000000e+00> : vector<12x64xf32>
    %30 = tpu.matmul %3, %29, %cst_21 {dimension_numbers = #tpu.dot_dimension_numbers<[1], [0], [0], [1], [0, 0, 1, 1], [], []>} : vector<12x12xbf16>, vector<12x64xbf16>, vector<12x64xf32> -> vector<12x64xf32>
    %31 = arith.truncf %30 : vector<12x64xf32> to vector<12x64xbf16>
    %c0_22 = arith.constant 0 : index
    %c0_23 = arith.constant 0 : index
    %32 = vector.load %arg9[%c0_22, %c0_23] : memref<64x64xbf16, #tpu.memory_space<vmem>>, vector<64x64xbf16>
    %cst_24 = arith.constant dense<0.000000e+00> : vector<12x64xf32>
    %33 = tpu.matmul %29, %32, %cst_24 {dimension_numbers = #tpu.dot_dimension_numbers<[1], [0], [0], [1], [0, 0, 1, 1], [], []>} : vector<12x64xbf16>, vector<64x64xbf16>, vector<12x64xf32> -> vector<12x64xf32>
    %c0_25 = arith.constant 0 : index
    %c0_26 = arith.constant 0 : index
    %34 = vector.load %arg10[%c0_25, %c0_26] : memref<1x64xf32, #tpu.memory_space<vmem>>, vector<1x64xf32>
    %35 = vector.broadcast %34 : vector<1x64xf32> to vector<12x64xf32>
    %36 = arith.addf %33, %35 : vector<12x64xf32>
    %c0_27 = arith.constant 0 : index
    %c0_28 = arith.constant 0 : index
    %37 = vector.load %arg11[%c0_27, %c0_28] : memref<64x64xbf16, #tpu.memory_space<vmem>>, vector<64x64xbf16>
    %cst_29 = arith.constant dense<0.000000e+00> : vector<12x64xf32>
    %38 = tpu.matmul %31, %37, %cst_29 {dimension_numbers = #tpu.dot_dimension_numbers<[1], [0], [0], [1], [0, 0, 1, 1], [], []>} : vector<12x64xbf16>, vector<64x64xbf16>, vector<12x64xf32> -> vector<12x64xf32>
    %39 = arith.addf %36, %38 : vector<12x64xf32>
    %c0_30 = arith.constant 0 : index
    %c0_31 = arith.constant 0 : index
    %40 = vector.load %arg12[%c0_30, %c0_31] : memref<1x64xf32, #tpu.memory_space<vmem>>, vector<1x64xf32>
    %41 = vector.broadcast %40 : vector<1x64xf32> to vector<12x64xf32>
    %42 = arith.addf %39, %41 : vector<12x64xf32>
    %43 = arith.mulf %42, %42 : vector<12x64xf32>
    %cst_32 = arith.constant dense<0.000000e+00> : vector<12xf32>
    %44 = vector.multi_reduction <add>, %43, %cst_32 [1] : vector<12x64xf32> to vector<12xf32>
    %45 = vector.shape_cast %44 : vector<12xf32> to vector<12x1xf32>
    %cst_33 = arith.constant 1.000000e-24 : f32
    %46 = vector.broadcast %cst_33 : f32 to vector<12x1xf32>
    %47 = arith.maximumf %45, %46 : vector<12x1xf32>
    %48 = math.rsqrt %47 : vector<12x1xf32>
    %49 = vector.broadcast %48 : vector<12x1xf32> to vector<12x64xf32>
    %50 = arith.mulf %42, %49 : vector<12x64xf32>
    %cst_34 = arith.constant 0.000000e+00 : f32
    %51 = vector.broadcast %cst_34 : f32 to vector<12x64xf32>
    %52 = arith.maximumf %50, %51 : vector<12x64xf32>
    %53 = arith.truncf %52 : vector<12x64xf32> to vector<12x64xbf16>
    %c0_35 = arith.constant 0 : index
    %c0_36 = arith.constant 0 : index
    %54 = vector.load %arg13[%c0_35, %c0_36] : memref<64x64xbf16, #tpu.memory_space<vmem>>, vector<64x64xbf16>
    %cst_37 = arith.constant dense<0.000000e+00> : vector<12x64xf32>
    %55 = tpu.matmul %53, %54, %cst_37 {dimension_numbers = #tpu.dot_dimension_numbers<[1], [0], [0], [1], [0, 0, 1, 1], [], []>} : vector<12x64xbf16>, vector<64x64xbf16>, vector<12x64xf32> -> vector<12x64xf32>
    %c0_38 = arith.constant 0 : index
    %c0_39 = arith.constant 0 : index
    %56 = vector.load %arg14[%c0_38, %c0_39] : memref<1x64xf32, #tpu.memory_space<vmem>>, vector<1x64xf32>
    %57 = vector.broadcast %56 : vector<1x64xf32> to vector<12x64xf32>
    %58 = arith.addf %55, %57 : vector<12x64xf32>
    %59 = arith.truncf %58 : vector<12x64xf32> to vector<12x64xbf16>
    %c0_40 = arith.constant 0 : index
    %c0_41 = arith.constant 0 : index
    %60 = vector.load %arg15[%c0_40, %c0_41] : memref<64x16xbf16, #tpu.memory_space<vmem>>, vector<64x16xbf16>
    %cst_42 = arith.constant dense<0.000000e+00> : vector<12x16xf32>
    %61 = tpu.matmul %59, %60, %cst_42 {dimension_numbers = #tpu.dot_dimension_numbers<[1], [0], [0], [1], [0, 0, 1, 1], [], []>} : vector<12x64xbf16>, vector<64x16xbf16>, vector<12x16xf32> -> vector<12x16xf32>
    %c0_43 = arith.constant 0 : index
    %c0_44 = arith.constant 0 : index
    %62 = vector.load %arg16[%c0_43, %c0_44] : memref<1x16xf32, #tpu.memory_space<vmem>>, vector<1x16xf32>
    %63 = vector.broadcast %62 : vector<1x16xf32> to vector<12x16xf32>
    %64 = arith.addf %61, %63 : vector<12x16xf32>
    %c0_45 = arith.constant 0 : index
    %c0_46 = arith.constant 0 : index
    %c0_47 = arith.constant 0 : index
    %65 = vector.load %arg3[%c0_45, %c0_46, %c0_47] : memref<1x5x16xbf16, #tpu.memory_space<vmem>>, vector<1x5x16xbf16>
    %66 = vector.shape_cast %65 : vector<1x5x16xbf16> to vector<5x16xbf16>
    %c0_48 = arith.constant 0 : index
    %c0_49 = arith.constant 0 : index
    %67 = vector.load %arg17[%c0_48, %c0_49] : memref<16x64xbf16, #tpu.memory_space<vmem>>, vector<16x64xbf16>
    %cst_50 = arith.constant dense<0.000000e+00> : vector<5x64xf32>
    %68 = tpu.matmul %66, %67, %cst_50 {dimension_numbers = #tpu.dot_dimension_numbers<[1], [0], [0], [1], [0, 0, 1, 1], [], []>} : vector<5x16xbf16>, vector<16x64xbf16>, vector<5x64xf32> -> vector<5x64xf32>
    %c0_51 = arith.constant 0 : index
    %c0_52 = arith.constant 0 : index
    %69 = vector.load %arg18[%c0_51, %c0_52] : memref<1x64xf32, #tpu.memory_space<vmem>>, vector<1x64xf32>
    %70 = vector.broadcast %69 : vector<1x64xf32> to vector<5x64xf32>
    %71 = arith.addf %68, %70 : vector<5x64xf32>
    %cst_53 = arith.constant 0.000000e+00 : f32
    %72 = vector.broadcast %cst_53 : f32 to vector<5x64xf32>
    %73 = arith.maximumf %71, %72 : vector<5x64xf32>
    %74 = arith.truncf %73 : vector<5x64xf32> to vector<5x64xbf16>
    %c0_54 = arith.constant 0 : index
    %c0_55 = arith.constant 0 : index
    %75 = vector.load %arg19[%c0_54, %c0_55] : memref<64x16xbf16, #tpu.memory_space<vmem>>, vector<64x16xbf16>
    %cst_56 = arith.constant dense<0.000000e+00> : vector<5x16xf32>
    %76 = tpu.matmul %74, %75, %cst_56 {dimension_numbers = #tpu.dot_dimension_numbers<[1], [0], [0], [1], [0, 0, 1, 1], [], []>} : vector<5x64xbf16>, vector<64x16xbf16>, vector<5x16xf32> -> vector<5x16xf32>
    %c0_57 = arith.constant 0 : index
    %c0_58 = arith.constant 0 : index
    %77 = vector.load %arg20[%c0_57, %c0_58] : memref<1x16xf32, #tpu.memory_space<vmem>>, vector<1x16xf32>
    %78 = vector.broadcast %77 : vector<1x16xf32> to vector<5x16xf32>
    %79 = arith.addf %76, %78 : vector<5x16xf32>
    %80 = arith.truncf %79 : vector<5x16xf32> to vector<5x16xbf16>
    %81 = arith.truncf %64 : vector<12x16xf32> to vector<12x16xbf16>
    %cst_59 = arith.constant dense<0.000000e+00> : vector<5x12xf32>
    %82 = tpu.matmul %80, %81, %cst_59 {dimension_numbers = #tpu.dot_dimension_numbers<[1], [1], [0], [0], [0, 0, 1, 0], [], []>} : vector<5x16xbf16>, vector<12x16xbf16>, vector<5x12xf32> -> vector<5x12xf32>
    %83 = arith.negf %82 : vector<5x12xf32>
    %84 = math.exp %83 : vector<5x12xf32>
    %cst_60 = arith.constant 1.000000e+00 : f32
    %85 = vector.broadcast %cst_60 : f32 to vector<5x12xf32>
    %86 = arith.addf %85, %84 : vector<5x12xf32>
    %87 = arith.divf %85, %86 : vector<5x12xf32>
    %88 = math.log %87 : vector<5x12xf32>
    %cst_61 = arith.constant -1.000000e+02 : f32
    %89 = vector.broadcast %cst_61 : f32 to vector<5x12xf32>
    %90 = arith.maximumf %88, %89 : vector<5x12xf32>
    %cst_62 = arith.constant 0.000000e+00 : f32
    %91 = vector.broadcast %cst_62 : f32 to vector<5x12xf32>
    %92 = arith.subf %91, %87 : vector<5x12xf32>
    %93 = math.log1p %92 : vector<5x12xf32>
    %cst_63 = arith.constant -1.000000e+02 : f32
    %94 = vector.broadcast %cst_63 : f32 to vector<5x12xf32>
    %95 = arith.maximumf %93, %94 : vector<5x12xf32>
    %96 = arith.mulf %5, %90 : vector<5x12xf32>
    %cst_64 = arith.constant 1.000000e+00 : f32
    %97 = vector.broadcast %cst_64 : f32 to vector<5x12xf32>
    %98 = arith.subf %97, %5 : vector<5x12xf32>
    %99 = arith.mulf %98, %95 : vector<5x12xf32>
    %100 = arith.addf %96, %99 : vector<5x12xf32>
    %cst_65 = arith.constant 0.000000e+00 : f32
    %101 = vector.broadcast %cst_65 : f32 to vector<5x12xf32>
    %102 = arith.subf %101, %100 : vector<5x12xf32>
    %103 = vector.shape_cast %102 : vector<5x12xf32> to vector<1x5x12xf32>
    %cst_66 = arith.constant dense<0.000000e+00> : vector<1xf32>
    %104 = vector.multi_reduction <add>, %103, %cst_66 [1, 2] : vector<1x5x12xf32> to vector<1xf32>
    %105 = vector.shape_cast %104 : vector<1xf32> to vector<1x1x1xf32>
    %106 = vector.extract %105[0, 0, 0] : f32 from vector<1x1x1xf32>
    %cst_67 = arith.constant 0.0166666675 : f32
    %107 = arith.mulf %106, %cst_67 : f32
    %108 = vector.broadcast %107 : f32 to vector<8x128xf32>
    %c0_68 = arith.constant 0 : index
    %c0_69 = arith.constant 0 : index
    %c0_70 = arith.constant 0 : index
    %109 = vector.load %arg21[%c0_68, %c0_69, %c0_70] : memref<1x8x128xf32, #tpu.memory_space<vmem>>, vector<1x8x128xf32>
    %110 = vector.shape_cast %109 : vector<1x8x128xf32> to vector<8x128xf32>
    %111 = vector.shape_cast %108 : vector<8x128xf32> to vector<1x8x128xf32>
    tpu.vector_store %arg21[%c0_68, %c0_69, %c0_70], %111 {strides = array<i32>} : memref<1x8x128xf32, #tpu.memory_space<vmem>>, vector<1x8x128xf32>,
    return
  }
  func.func @transform_0(%arg0: i32) -> (i32, i32, i32) {
    %c0_i32 = arith.constant 0 : i32
    %c0_i32_0 = arith.constant 0 : i32
    %c0_i32_1 = arith.constant 0 : i32
    return %arg0, %c0_i32, %c0_i32_0 : i32, i32, i32
  }
  func.func @transform_1(%arg0: i32) -> (i32, i32, i32) {
    %c0_i32 = arith.constant 0 : i32
    %c0_i32_0 = arith.constant 0 : i32
    %c0_i32_1 = arith.constant 0 : i32
    return %arg0, %c0_i32, %c0_i32_0 : i32, i32, i32
  }
  func.func @transform_2(%arg0: i32) -> (i32, i32, i32) {
    %c0_i32 = arith.constant 0 : i32
    %c0_i32_0 = arith.constant 0 : i32
    %c0_i32_1 = arith.constant 0 : i32
    return %arg0, %c0_i32, %c0_i32_0 : i32, i32, i32
  }
  func.func @transform_3(%arg0: i32) -> (i32, i32, i32) {
    %c0_i32 = arith.constant 0 : i32
    %c0_i32_0 = arith.constant 0 : i32
    %c0_i32_1 = arith.constant 0 : i32
    return %arg0, %c0_i32, %c0_i32_0 : i32, i32, i32
  }
  func.func @transform_4(%arg0: i32) -> (i32, i32) {
    %c0_i32 = arith.constant 0 : i32
    %c0_i32_0 = arith.constant 0 : i32
    %c0_i32_1 = arith.constant 0 : i32
    return %c0_i32, %c0_i32_0 : i32, i32
  }
  func.func @transform_5(%arg0: i32) -> (i32, i32) {
    %c0_i32 = arith.constant 0 : i32
    %c0_i32_0 = arith.constant 0 : i32
    %c0_i32_1 = arith.constant 0 : i32
    return %c0_i32, %c0_i32_0 : i32, i32
  }
  func.func @transform_6(%arg0: i32) -> (i32, i32) {
    %c0_i32 = arith.constant 0 : i32
    %c0_i32_0 = arith.constant 0 : i32
    %c0_i32_1 = arith.constant 0 : i32
    return %c0_i32, %c0_i32_0 : i32, i32
  }
  func.func @transform_7(%arg0: i32) -> (i32, i32) {
    %c0_i32 = arith.constant 0 : i32
    %c0_i32_0 = arith.constant 0 : i32
    %c0_i32_1 = arith.constant 0 : i32
    return %c0_i32, %c0_i32_0 : i32, i32
  }
  func.func @transform_8(%arg0: i32) -> (i32, i32) {
    %c0_i32 = arith.constant 0 : i32
    %c0_i32_0 = arith.constant 0 : i32
    %c0_i32_1 = arith.constant 0 : i32
    return %c0_i32, %c0_i32_0 : i32, i32
  }
  func.func @transform_9(%arg0: i32) -> (i32, i32) {
    %c0_i32 = arith.constant 0 : i32
    %c0_i32_0 = arith.constant 0 : i32
    %c0_i32_1 = arith.constant 0 : i32
    return %c0_i32, %c0_i32_0 : i32, i32
  }
  func.func @transform_10(%arg0: i32) -> (i32, i32) {
    %c0_i32 = arith.constant 0 : i32
    %c0_i32_0 = arith.constant 0 : i32
    %c0_i32_1 = arith.constant 0 : i32
    return %c0_i32, %c0_i32_0 : i32, i32
  }
  func.func @transform_11(%arg0: i32) -> (i32, i32) {
    %c0_i32 = arith.constant 0 : i32
    %c0_i32_0 = arith.constant 0 : i32
    %c0_i32_1 = arith.constant 0 : i32
    return %c0_i32, %c0_i32_0 : i32, i32
  }
  func.func @transform_12(%arg0: i32) -> (i32, i32) {
    %c0_i32 = arith.constant 0 : i32
    %c0_i32_0 = arith.constant 0 : i32
    %c0_i32_1 = arith.constant 0 : i32
    return %c0_i32, %c0_i32_0 : i32, i32
  }
  func.func @transform_13(%arg0: i32) -> (i32, i32) {
    %c0_i32 = arith.constant 0 : i32
    %c0_i32_0 = arith.constant 0 : i32
    %c0_i32_1 = arith.constant 0 : i32
    return %c0_i32, %c0_i32_0 : i32, i32
  }
  func.func @transform_14(%arg0: i32) -> (i32, i32) {
    %c0_i32 = arith.constant 0 : i32
    %c0_i32_0 = arith.constant 0 : i32
    %c0_i32_1 = arith.constant 0 : i32
    return %c0_i32, %c0_i32_0 : i32, i32
  }
  func.func @transform_15(%arg0: i32) -> (i32, i32) {
    %c0_i32 = arith.constant 0 : i32
    %c0_i32_0 = arith.constant 0 : i32
    %c0_i32_1 = arith.constant 0 : i32
    return %c0_i32, %c0_i32_0 : i32, i32
  }
  func.func @transform_16(%arg0: i32) -> (i32, i32) {
    %c0_i32 = arith.constant 0 : i32
    %c0_i32_0 = arith.constant 0 : i32
    %c0_i32_1 = arith.constant 0 : i32
    return %c0_i32, %c0_i32_0 : i32, i32
  }
  func.func @transform_17(%arg0: i32) -> (i32, i32) {
    %c0_i32 = arith.constant 0 : i32
    %c0_i32_0 = arith.constant 0 : i32
    %c0_i32_1 = arith.constant 0 : i32
    return %c0_i32, %c0_i32_0 : i32, i32
  }
  func.func @transform_18(%arg0: i32) -> (i32, i32) {
    %c0_i32 = arith.constant 0 : i32
    %c0_i32_0 = arith.constant 0 : i32
    %c0_i32_1 = arith.constant 0 : i32
    return %c0_i32, %c0_i32_0 : i32, i32
  }
  func.func @transform_19(%arg0: i32) -> (i32, i32) {
    %c0_i32 = arith.constant 0 : i32
    %c0_i32_0 = arith.constant 0 : i32
    %c0_i32_1 = arith.constant 0 : i32
    return %c0_i32, %c0_i32_0 : i32, i32
  }
  func.func @transform_20(%arg0: i32) -> (i32, i32, i32) {
    %c0_i32 = arith.constant 0 : i32
    %c0_i32_0 = arith.constant 0 : i32
    %c0_i32_1 = arith.constant 0 : i32
    return %arg0, %c0_i32, %c0_i32_0 : i32, i32, i32
  }
}

</mosaic_0001>

<bundles_post_ra>
// kernel: tpu_custom_call.1
= control target key start
LH: loop header
LB: loop body
LE: loop exit
PB: predicated region body
PF: predicated region fallthrough
CT: control target
= control target key end

     0   :  { %s2387_s0 = inlined_call_operand.vmem [shape: bf16[2,12,17], index: 0, kind: input, shape index: {}]   ;;  %s2388_s1 = inlined_call_operand.vmem [shape: bf16[2,12,12], index: 1, kind: input, shape index: {}]   ;;  %s2389_s2 = inlined_call_operand.vmem [shape: bf16[2,5,16], index: 2, kind: input, shape index: {}]   ;;  %s2390_s3 = inlined_call_operand.vmem [shape: f32[2,5,12], index: 3, kind: input, shape index: {}]   ;;  %s2391_s4 = inlined_call_operand.vmem [shape: bf16[17,64], index: 4, kind: input, shape index: {}]   ;;  %s2392_s5 = inlined_call_operand.vmem [shape: f32[1,64], index: 5, kind: input, shape index: {}]   ;;  %s2393_s6 = inlined_call_operand.vmem [shape: bf16[17,64], index: 6, kind: input, shape index: {}]   ;;  %s2394_s7 = inlined_call_operand.vmem [shape: f32[1,64], index: 7, kind: input, shape index: {}]   ;;  %s2395_s8 = inlined_call_operand.vmem [shape: bf16[64,64], index: 8, kind: input, shape index: {}]   ;;  %s2396_s9 = inlined_call_operand.vmem [shape: f32[1,64], index: 9, kind: input, shape index: {}]   ;;  %s2397_s10 = inlined_call_operand.vmem [shape: bf16[64,64], index: 10, kind: input, shape index: {}]   ;;  %s2398_s11 = inlined_call_operand.vmem [shape: f32[1,64], index: 11, kind: input, shape index: {}]   ;;  %s2399_s12 = inlined_call_operand.vmem [shape: bf16[64,64], index: 12, kind: input, shape index: {}]   ;;  %s2400_s13 = inlined_call_operand.vmem [shape: f32[1,64], index: 13, kind: input, shape index: {}]   ;;  %s2401_s14 = inlined_call_operand.vmem [shape: bf16[64,16], index: 14, kind: input, shape index: {}]   ;;  %s2402_s15 = inlined_call_operand.vmem [shape: f32[1,16], index: 15, kind: input, shape index: {}]   ;;  %s2403_s16 = inlined_call_operand.vmem [shape: bf16[16,64], index: 16, kind: input, shape index: {}]   ;;  %s2404_s17 = inlined_call_operand.vmem [shape: f32[1,64], index: 17, kind: input, shape index: {}]   ;;  %s2405_s18 = inlined_call_operand.vmem [shape: bf16[64,16], index: 18, kind: input, shape index: {}]   ;;  %s2406_s19 = inlined_call_operand.vmem [shape: f32[1,16], index: 19, kind: input, shape index: {}]   ;;  %s2407_s20 = inlined_call_operand.hbm [shape: f32[2,8,128], index: 20, kind: output, shape index: {}]  }
   0x1   :  { %2419 = sst [smem:[#allocation13_spill]] %s2387_s0 }
   0x2   :  { %2420 = sst [smem:[#allocation14_spill]] %s2388_s1 }
   0x3   :  { %2421 = sst [smem:[#allocation15_spill]] %s2389_s2 }
   0x4   :  { %2422 = sst [smem:[#allocation16_spill]] %s2390_s3 }
   0x5   :  { %2423 = sst [smem:[#allocation17_spill]] %s2391_s4 }
   0x6   :  { %2424 = sst [smem:[#allocation18_spill]] %s2392_s5 }
   0x7   :  { %2425 = sst [smem:[#allocation19_spill]] %s2393_s6 }
   0x8   :  { %2426 = sst [smem:[#allocation20_spill]] %s2407_s20 }
   0x9   :  { %25 = vsyncpa [#allocation3], 0 }
   0xa   :  { %27 = vsyncpa [#allocation3 + $0x1], 0  ;;  %s2105_s1 = smov 0   ;;  %s2107_s22 = smov 0  }
   0xb   :  { %s2109_s23 = smov 0   ;;  %s2111_s24 = smov 0  }
   0xc LB: > { %2427 = sst [smem:[#allocation5_spill]] %s1982_s1  ;;  %s2126_s2 = sadd.s32 4294967295, %s1994_s24   ;;  %s1994_s24 = sphi %s2111_s24, %s2450_s24   ;;  %s1990_s23 = sphi %s2109_s23, %s2452_s23   ;;  %s1986_s22 = sphi %s2107_s22, %s2454_s22   ;;  %s1982_s1 = sphi %s2105_s1, %s2453_s1  }
   0xd   : > { %2428 = sst [smem:[#allocation6_spill]] %s1990_s23  ;;  %s1644_s25 = sadd.s32 4294967294, %s1994_s24  }
   0xe   : > { %2429 = sst [smem:[#allocation7_spill]] %s1994_s24  ;;  %s2130_s3 = sadd.s32 1, %s1994_s24  }
   0xf   : > { %2430 = sst [smem:[#allocation8_spill]] %s2126_s2  ;;  %s480_s26 = sadd.s32 1, %s1990_s23 }
  0x10   : > { %2431 = sst [smem:[#allocation9_spill]] %s2130_s3  ;;  %s477_s27 = ssub.s32 %s1994_s24, %s2130_s3 }
  0x11   : > { %p490_p0 = scmp.ne.s32.totalorder %s1990_s23, %s1986_s22  ;;  %p478_p1 = scmp.eq.s32.totalorder %s477_s27, 0 }
  0x12   : > { %p491_p2 = scmp.eq.s32.totalorder %s2126_s2, 1  ;;  %p496_p3 = scmp.ne.s32.totalorder %s1986_s22, %s1982_s1 }
  0x13   : > { %p497_p4 = scmp.eq.s32.totalorder %s1644_s25, 1  ;;  %p1647_p7 = scmp.ge.s32.totalorder %s1994_s24, 1 }
  0x14   : > { %s2141_s28 = scalar_select %p478_p1, %s1990_s23, %s480_s26  }
  0x15   : > { %p2143_p5 = por %p491_p2, %p490_p0  ;;  %p2147_p6 = por %p497_p4, %p496_p3 }
  0x16   : > { %2432 = sst [smem:[#allocation10_spill]] %s2141_s28  ;;  %p593_p8 = scmp.lt.s32.totalorder %s1994_s24, 3 }
  0x17   : > { %s2433_s4 = scalar_select %p2143_p5, 1, 0 }
  0x18   : > { %s2435_s29 = scalar_select %p2147_p6, 1, 0 }
  0x19   : > { %2434 = sst [smem:[#allocation11_spill]] %s2433_s4  ;;  %p594_p9 = pnand %p1647_p7, %p593_p8 }
  0x1a   : > { %2436 = sst [smem:[#allocation12_spill]] %s2435_s29  ;;  %p664_p10 = scmp.lt.s32.totalorder (!%p594_p9), %s2126_s2, 1 }
  0x1b   : > { %597 = sbr.rel (%p594_p9) target bundleno = 2056 (0x808), region = 100  ;;  %s2437_s21 = sld [smem:[#allocation17_spill]] (!%p594_p9) }
  0x1c   : > { %s2438_s6 = sld [smem:[#allocation19_spill]] (!%p594_p9) }
  0x1d   : > { %s2439_s29 = sld [smem:[#allocation13_spill]] (!%p594_p9) }
  0x1e   : > { %s2440_s4 = sld [smem:[#allocation14_spill]] (!%p594_p9) }
  0x1f   : > { %s2441_s5 = sld [smem:[#allocation18_spill]] (!%p594_p9) }
  0x20   : > { %vm702_vm0 = vcmask 1045504   ;;  %v1996_v0 = vmov 0.0   ;;  %vm1997_vm1 = vmmov 0   ;;  %vm698_vm2 = vcmask 97280   ;;  %s2161_s25 = scalar_select %p664_p10, %s2126_s2, 1  ;;  %v1897_v37 = vld [vmem:[%s2395_s8 + $0x18] sm:$0xff]  }
  0x21   : > { %1747 = vmatprep.subr.bf16.mxu0 %v1996_v0  ;;  %1749 = vmatprep.mubr.msk.bf16.mxu0 %vm1997_vm1, %v1996_v0  ;;  %v1893_v1 = vld [vmem:[%s2437_s21 + $0x8] ss:$0 sps:$4 sm:$0x11]   ;;  %vm770_vm3 = vcmask 1040384   ;;  %v1998_v2 = vmov 0   ;;  %v1895_v6 = vld [vmem:[%s2437_s21] sm:$0xff]  }
  0x22   : > { %1753 = vmatprep.subr.bf16.mxu1 %v1996_v0  ;;  %1757 = vmatprep.mubr.msk.bf16.mxu1 %vm1997_vm1, %v1996_v0  ;;  %v772_v3 = vsel %vm770_vm3, 65535, %v1998_v2  ;;  %v1894_v4 = vld [vmem:[%s2438_s6 + $0x8] ss:$0 sps:$4 sm:$0x11]   ;;  %s2170_s28 = sshll.u32 %s2161_s25, 3  ;;  %vm767_vm4 = vcmask 138240  }
  0x23   : > { %v774_v5 = vand.u32 %v1893_v1, %v772_v3  ;;  %s668_s1 = scalar_lea.vmem %s2439_s29, %s2170_s28  ;;  %v833_v10 = vand.u32 %v1894_v4, %v772_v3  ;;  %v1896_v11 = vld [vmem:[%s2438_s6] sm:$0xff]   ;;  %vm889_vm5 = vcmask 523264   ;;  %vm893_vm6 = vcmask 519168   ;;  %v1898_v38 = vld [vmem:[%s2395_s8 + $0x10] sm:$0xff]   ;;  %v1899_v39 = vld [vmem:[%s2395_s8 + $0x8] sm:$0xff]   ;;  %s2442_s29 = sld [smem:[#allocation15_spill]] }
  0x24   : > { %s673_s2 = scalar_lea.vmem %s2440_s4, %s2170_s28  ;;  %v1891_v7 = vld [vmem:[%s668_s1] sm:$0x3f]   ;;  %v1901_v53 = vld [vmem:[%s2397_s10 + $0x18] sm:$0xff]   ;;  %v1902_v54 = vld [vmem:[%s2397_s10 + $0x10] sm:$0xff]   ;;  %vm1320_vm7 = vcmask 130048   ;;  %s2443_s3 = sld [smem:[#allocation16_spill]] }
  0x25   : > { %1754 = vmatpush3.bf16.msra.mxu1 %v774_v5  ;;  %v2183_v8 = vld [vmem:[%s673_s2] sm:$0x3f]   ;;  %v704_v9 = vsel %vm702_vm0, %v1891_v7, 0  ;;  %v1903_v55 = vld [vmem:[%s2397_s10 + $0x8] sm:$0xff]   ;;  %s1653_s2 = sshll.u32 %s2161_s25, 2  ;;  %vm1521_vm9 = vcmask 94208  }
  0x26   : > { %1755 = vmatprep.subr.bf16.mxu1 %v1996_v0  ;;  %1748 = vmatpush3.bf16.msra.mxu0 %v704_v9  ;;  %v1658_v21 = vld [vmem:[%s2441_s5] ss:$0 sm:$0xff]  ;;  %s1999_s6 = smov [#allocation2]  }
  0x27   : > { %1761 = vmatprep.subr.bf16.mxu0 %v1996_v0  ;;  %v1665_v24 = vld [vmem:[%s2394_s7] ss:$0 sm:$0xff] }
  0x28   : > { %v1900_v40 = vld [vmem:[%s2395_s8] sm:$0xff]  }
  0x29   : > { %1756 = vmatpush3.bf16.msra.mxu1 %v1895_v6  ;;  %1750 = vmatmul.mubr.msk.bf16.vlgmr.msra.gmra.mxu0 %vm698_vm2, %v2183_v8  ;;  %v1904_v56 = vld [vmem:[%s2397_s10] sm:$0xff]   ;;  %s677_s26 = scalar_lea.vmem %s2442_s29, %s1653_s2  ;;  %s2444_s29 = sld [smem:[#allocation8_spill]] }
  0x2a   : > { %1769 = vmatprep.subr.bf16.mxu1 %v1996_v0  ;;  %1762 = vmatpush3.bf16.msra.mxu0 %v833_v10  ;;  %v1667_v3 = vld [vmem:[%s2396_s9] ss:$0 sm:$0xff]  ;;  %s681_s4 = scalar_lea.vmem %s2443_s3, %s2170_s28  ;;  %s2446_s2 = sld [smem:[#allocation20_spill]] }
  0x2b   : > { %1763 = vmatprep.subr.bf16.mxu0 %v1996_v0  ;;  %1765 = vmatprep.mubr.msk.bf16.mxu0 %vm1997_vm1, %v1996_v0  ;;  %v1678_v6 = vld [vmem:[%s2398_s11] ss:$0 sm:$0xff] }
  0x2c   : > { %1758 = vmatmul.mubr.msk.bf16.vlgmr.msra.gmra.mxu1 %vm767_vm4, %v1891_v7 }
  0x2d   : > { %1771 = vmatprep.mubr.msk.bf16.mxu1 %vm1997_vm1, %v1996_v0 }
  0x2e   : > { %1764 = vmatpush3.bf16.msra.mxu0 %v1896_v11 }
  0x2f   : > { %1775 = vmatprep.subr.bf16.mxu0 %v1996_v0  ;;  %s1703_s0 = sshll.u32 %s2444_s29, 7 }
  0x30   : > { %s2352_s3 = scalar_lea.hbm %s2446_s2, %s1703_s0 }
  0xe9   : > { %v740_v12 = vpop.f32.mrf.mxu0 }
  0xeb   : > { %v1751_v14 = vpop.f32.mrf.mxu0 }
  0xec   : > { %v810_v13 = vpop.f32.mrf.mxu1 }
  0xed   : > { %v743_v16 = vpop.f32.mrf.mxu0  ;;  %v811_v22 = vadd.f32 %v1658_v21, %v810_v13 }
  0xee   : > { %v1759_v15 = vpop.f32.mrf.mxu1  ;;  %v747_v17 = vpack.c.bf16 %v743_v16, %v740_v12 }
  0xef   : > { %v1752_v19 = vpop.f32.mrf.mxu0 }
  0xf0   : > { %v813_v18 = vpop.f32.mrf.mxu1  ;;  %1766 = vmatmul.mubr.msk.bf16.vlgmr.msra.gmra.mxu0 %vm767_vm4, %v747_v17  ;;  %v1905_v19 = vld [vmem:[%s2399_s12 + $0x18] sm:$0xff]  }
  0xf1   : > { %1783 = vmatprep.mubr.msk.bf16.mxu0 %vm1997_vm1, %v1996_v0  ;;  %v814_v27 = vadd.f32 %v1658_v21, %v813_v18  ;;  %1776 = vmatpush3.bf16.msra.mxu0 %v1897_v37  ;;  %v1907_v21 = vld [vmem:[%s2399_s12 + $0x8] sm:$0xff]   ;;  %v1304_v37 = vld [vmem:[%s677_s26] sm:$0x7]  ;;  %s661_s26 = sand.u32 1, %s1986_s22  }
  0xf2   : > { %v1760_v20 = vpop.f32.mrf.mxu1  ;;  %1777 = vmatprep.subr.bf16.mxu0 %v1996_v0  ;;  %s1648_s25 = sshll.u32 %s661_s26, 3 }
  0xf3   : > { %v1906_v20 = vld [vmem:[%s2399_s12 + $0x10] sm:$0xff]   ;;  %s663_s27 = scalar_lea.vmem [#allocation2], %s1648_s25  ;;  %s1938_s25 = sshll.u32 %s1999_s6, 4  ;;  %s1939_s25 = int_to_ptr.vmem [resolvable:$false] %s1938_s25 }
  0xf4   : > { %s1549_s30 = sshll.u32 %s663_s27, 4  ;;  %s1940_s29 = scalar_lea.vmem %s1939_s25, 256  ;;  %s1550_s30 = int_to_ptr.vmem [resolvable:$true] %s1549_s30 }
  0xf5   : > { %1778 = vmatpush3.bf16.msra.mxu0 %v1898_v38  ;;  %v1912_v38 = vld [vmem:[%s2401_s14 + $0x8] sm:$0xff]   ;;  %s1934_s5 = scalar_lea.vmem %s1550_s30, 128  ;;  %p1941_p0 = scmp.lt.s32.totalorder %s1550_s30, %s1939_s25 }
  0xf6   : > { %1779 = vmatprep.subr.bf16.mxu0 %v1996_v0  ;;  %p1935_p11 = scmp.ne.s32.totalorder %s1550_s30, %s1934_s5  ;;  %p1942_p1 = scmp.lt.s32.totalorder %s1940_s29, %s1934_s5 }
  0xf8   : > { %p1936_p12 = pnand %p1935_p11, %p2143_p5  ;;  %p1943_p2 = por %p1942_p1, %p1941_p0 }
  0xf9   : > { %1780 = vmatpush3.bf16.msra.mxu0 %v1899_v39  ;;  %v1913_v39 = vld [vmem:[%s2401_s14] sm:$0xff]  }
  0xfa   : > { %1781 = vmatprep.subr.bf16.mxu0 %v1996_v0  ;;  %p1937_p13 = pneg %p1936_p12 }
  0xfc   : > { %p1944_p3 = pnand %p1943_p2, %p1937_p13 }
  0xfd   : > { %1782 = vmatpush3.bf16.msra.mxu0 %v1900_v40 }
  0xfe   : > { %1799 = vmatprep.subr.bf16.mxu0 %v1996_v0 }
 0x1b0   : > { %v869_v23 = vpop.f32.mrf.mxu0 }
 0x1b1   : > { %v876_v25 = vadd.f32 %v869_v23, %v811_v22  ;;  %v1908_v22 = vld [vmem:[%s2399_s12] sm:$0xff]   ;;  %v1910_v23 = vld [vmem:[%s2401_s14 + $0x18] sm:$0xff]  }
 0x1b2   : > { %v1767_v26 = vpop.f32.mrf.mxu0 }
 0x1b3   : > { %v885_v28 = vadd.f32 %v1665_v24, %v876_v25 }
 0x1b4   : > { %v872_v29 = vpop.f32.mrf.mxu0 }
 0x1b5   : > { %v877_v30 = vadd.f32 %v872_v29, %v814_v27  ;;  %v887_v31 = vmul.f32 %v885_v28, %v885_v28 }
 0x1b6   : > { %v1768_v32 = vpop.f32.mrf.mxu0 }
 0x1b7   : > { %v886_v33 = vadd.f32 %v1665_v24, %v877_v30  ;;  %v890_v34 = vsel %vm889_vm5, %v887_v31, 0.0  ;;  %v1911_v24 = vld [vmem:[%s2401_s14 + $0x10] sm:$0xff]  }
 0x1b8   : > { %891 = vadd.xlane.f32.xlu0 %v890_v34 }
 0x1b9   : > { %v888_v35 = vmul.f32 %v886_v33, %v886_v33 }
 0x1bb   : > { %v894_v36 = vsel %vm893_vm6, %v888_v35, 0.0  ;;  %v1909_v35 = vld [vmem:[%s2403_s16] sm:$0xff]  }
 0x1bc   : > { %895 = vadd.xlane.f32.xlu0 %v894_v36 }
 0x241   : > { %v892_v41 = vpop.xlane.xlu0 %891 }
 0x242   : > { %v897_v42 = vmax.f32 %v892_v41, 1e-24  ;;  %v1679_v41 = vld [vmem:[%s2400_s13] ss:$0 sm:$0xff] }
 0x244   : > { %1918 = vrsqrt.f32 %v897_v42 }
 0x245   : > { %v896_v43 = vpop.xlane.xlu0 %895 }
 0x246   : > { %v898_v44 = vmax.f32 %v896_v43, 1e-24 }
 0x248   : > { %1920 = vrsqrt.f32 %v898_v44 }
 0x251   : > { %v1919_v45 = vpop.eup %1918 }
 0x252   : > { %v901_v46 = vmul.f32 %v1919_v45, %v885_v28 }
 0x254   : > { %v903_v49 = vmax.f32 %v901_v46, 0.0 }
 0x255   : > { %v1921_v47 = vpop.eup %1920 }
 0x256   : > { %v902_v48 = vmul.f32 %v1921_v47, %v886_v33  ;;  %v1914_v47 = vld [vmem:[%s2405_s18 + $0x18] sm:$0xff]  }
 0x258   : > { %v904_v50 = vmax.f32 %v902_v48, 0.0 }
 0x25a   : > { %v905_v51 = vpack.c.bf16 %v904_v50, %v903_v49  ;;  %v1915_v50 = vld [vmem:[%s2405_s18 + $0x10] sm:$0xff]  }
 0x25c   : > { %1784 = vmatmul.mubr.msk.bf16.vlgmr.msra.gmra.mxu0 %vm889_vm5, %v905_v51  ;;  %v907_v52 = vsel %vm702_vm0, %v905_v51, 0  ;;  %v1691_v51 = vld [vmem:[%s2404_s17] ss:$0 sm:$0xff] }
 0x25d   : > { %1770 = vmatpush3.bf16.msra.mxu1 %v907_v52  ;;  %1807 = vmatprep.mubr.msk.bf16.mxu0 %vm1997_vm1, %v1996_v0 }
 0x25e   : > { %1787 = vmatprep.subr.bf16.mxu1 %v1996_v0  ;;  %1800 = vmatpush3.bf16.msra.mxu0 %v1905_v19 }
 0x25f   : > { %1801 = vmatprep.subr.bf16.mxu0 %v1996_v0 }
 0x260   : > { %1772 = vmatmul.mubr.msk.bf16.vlgmr.msra.gmra.mxu1 %vm698_vm2, %v2183_v8 }
 0x261   : > { %1788 = vmatpush3.bf16.msra.mxu1 %v1901_v53  ;;  %1795 = vmatprep.mubr.msk.bf16.mxu1 %vm1997_vm1, %v1996_v0 }
 0x262   : > { %1789 = vmatprep.subr.bf16.mxu1 %v1996_v0  ;;  %1802 = vmatpush3.bf16.msra.mxu0 %v1906_v20 }
 0x263   : > { %1803 = vmatprep.subr.bf16.mxu0 %v1996_v0 }
 0x265   : > { %1790 = vmatpush3.bf16.msra.mxu1 %v1902_v54 }
 0x266   : > { %1791 = vmatprep.subr.bf16.mxu1 %v1996_v0  ;;  %1804 = vmatpush3.bf16.msra.mxu0 %v1907_v21 }
 0x267   : > { %1805 = vmatprep.subr.bf16.mxu0 %v1996_v0 }
 0x269   : > { %1792 = vmatpush3.bf16.msra.mxu1 %v1903_v55  ;;  %v1916_v55 = vld [vmem:[%s2405_s18 + $0x8] sm:$0xff]  }
 0x26a   : > { %1793 = vmatprep.subr.bf16.mxu1 %v1996_v0  ;;  %1806 = vmatpush3.bf16.msra.mxu0 %v1908_v22 }
 0x26b   : > { %1823 = vmatprep.subr.bf16.mxu0 %v1996_v0 }
 0x26d   : > { %1794 = vmatpush3.bf16.msra.mxu1 %v1904_v56 }
 0x26e   : > { %1811 = vmatprep.subr.bf16.mxu1 %v1996_v0 }
 0x31c   : > { %v1026_v57 = vpop.f32.mrf.mxu0 }
 0x31d   : > { %v1027_v4 = vadd.f32 %v1667_v3, %v1026_v57 }
 0x31e   : > { %v1785_v58 = vpop.f32.mrf.mxu0 }
 0x31f   : > { %v1917_v58 = vld [vmem:[%s2405_s18] sm:$0xff]  }
 0x320   : > { %v943_v59 = vpop.f32.mrf.mxu1  ;;  %v1029_v60 = vpop.f32.mrf.mxu0 }
 0x321   : > { %v1030_v9 = vadd.f32 %v1667_v3, %v1029_v60 }
 0x322   : > { %v1773_v61 = vpop.f32.mrf.mxu1  ;;  %v1786_v62 = vpop.f32.mrf.mxu0 }
 0x323   : > { %v1685_v61 = vld [vmem:[%s2402_s15] ss:$0 sm:$0xff] }
 0x324   : > { %v946_v63 = vpop.f32.mrf.mxu1 }
 0x325   : > { %v950_v1 = vpack.c.bf16 %v946_v63, %v943_v59 }
 0x326   : > { %v1774_v2 = vpop.f32.mrf.mxu1 }
 0x327   : > { %1796 = vmatmul.mubr.msk.bf16.vlgmr.msra.gmra.mxu1 %vm889_vm5, %v950_v1 }
 0x328   : > { %1819 = vmatprep.mubr.msk.bf16.mxu1 %vm1997_vm1, %v1996_v0  ;;  %1812 = vmatpush3.bf16.msra.mxu1 %v1910_v23 }
 0x329   : > { %1813 = vmatprep.subr.bf16.mxu1 %v1996_v0 }
 0x32c   : > { %1814 = vmatpush3.bf16.msra.mxu1 %v1911_v24 }
 0x32d   : > { %1815 = vmatprep.subr.bf16.mxu1 %v1996_v0 }
 0x330   : > { %1816 = vmatpush3.bf16.msra.mxu1 %v1912_v38 }
 0x331   : > { %1817 = vmatprep.subr.bf16.mxu1 %v1996_v0 }
 0x334   : > { %1818 = vmatpush3.bf16.msra.mxu1 %v1913_v39 }
 0x335   : > { %1829 = vmatprep.subr.bf16.mxu1 %v1996_v0 }
 0x3e7   : > { %v1102_v5 = vpop.f32.mrf.mxu1 }
 0x3e8   : > { %v1109_v7 = vadd.f32 %v1102_v5, %v1027_v4 }
 0x3e9   : > { %v1797_v8 = vpop.f32.mrf.mxu1 }
 0x3ea   : > { %v1118_v10 = vadd.f32 %v1678_v6, %v1109_v7 }
 0x3eb   : > { %v1105_v11 = vpop.f32.mrf.mxu1 }
 0x3ec   : > { %v1110_v12 = vadd.f32 %v1105_v11, %v1030_v9  ;;  %v1120_v13 = vmul.f32 %v1118_v10, %v1118_v10 }
 0x3ed   : > { %v1798_v14 = vpop.f32.mrf.mxu1 }
 0x3ee   : > { %v1119_v15 = vadd.f32 %v1678_v6, %v1110_v12  ;;  %v1122_v16 = vsel %vm889_vm5, %v1120_v13, 0.0 }
 0x3ef   : > { %1123 = vadd.xlane.f32.xlu1 %v1122_v16 }
 0x3f0   : > { %v1121_v17 = vmul.f32 %v1119_v15, %v1119_v15 }
 0x3f2   : > { %v1125_v18 = vsel %vm893_vm6, %v1121_v17, 0.0 }
 0x3f3   : > { %1126 = vadd.xlane.f32.xlu1 %v1125_v18 }
 0x478   : > { %v1124_v25 = vpop.xlane.xlu1 %1123 }
 0x479   : > { %v1128_v26 = vmax.f32 %v1124_v25, 1e-24 }
 0x47b   : > { %1922 = vrsqrt.f32 %v1128_v26 }
 0x47c   : > { %v1127_v27 = vpop.xlane.xlu1 %1126 }
 0x47d   : > { %v1129_v28 = vmax.f32 %v1127_v27, 1e-24 }
 0x47f   : > { %1924 = vrsqrt.f32 %v1129_v28  ;;  %v687_v28 = vld [vmem:[%s681_s4] sm:$0x1f]  ;;  %s1536_s4 = scalar_lea.sflag [#allocation3], %s661_s26 }
 0x488   : > { %v1923_v29 = vpop.eup %1922 }
 0x489   : > { %v1132_v30 = vmul.f32 %v1923_v29, %v1118_v10 }
 0x48b   : > { %v1134_v33 = vmax.f32 %v1132_v30, 0.0 }
 0x48c   : > { %v1925_v31 = vpop.eup %1924 }
 0x48d   : > { %v1133_v32 = vmul.f32 %v1925_v31, %v1119_v15 }
 0x48f   : > { %v1135_v34 = vmax.f32 %v1133_v32, 0.0  ;;  %v1517_v32 = vsub.f32 1.0, %v687_v28 }
 0x491   : > { %v1136_v36 = vpack.c.bf16 %v1135_v34, %v1134_v33 }
 0x493   : > { %1808 = vmatmul.mubr.msk.bf16.vlgmr.msra.gmra.mxu0 %vm889_vm5, %v1136_v36 }
 0x494   : > { %1824 = vmatpush3.bf16.msra.mxu0 %v1909_v35  ;;  %1825 = vmatprep.mubr.msk.bf16.mxu0 %vm1997_vm1, %v1996_v0 }
 0x495   : > { %1841 = vmatprep.subr.bf16.mxu0 %v1996_v0 }
 0x49b   : > { %1826 = vmatmul.mubr.msk.bf16.vlgmr.msra.gmra.mxu0 %vm1320_vm7, %v1304_v37 }
 0x49c   : > { %1843 = vmatprep.mubr.msk.bf16.mxu0 %vm1997_vm1, %v1996_v0 }
 0x553   : > { %v1213_v40 = vpop.f32.mrf.mxu0 }
 0x554   : > { %v1214_v44 = vadd.f32 %v1679_v41, %v1213_v40 }
 0x555   : > { %v1809_v42 = vpop.f32.mrf.mxu0 }
 0x557   : > { %v1216_v43 = vpop.f32.mrf.mxu0 }
 0x558   : > { %v1217_v45 = vadd.f32 %v1679_v41, %v1216_v43 }
 0x559   : > { %v1810_v46 = vpop.f32.mrf.mxu0 }
 0x55a   : > { %v1220_v48 = vpack.c.bf16 %v1217_v45, %v1214_v44 }
 0x55b   : > { %v1358_v49 = vpop.f32.mrf.mxu0 }
 0x55c   : > { %1820 = vmatmul.mubr.msk.bf16.vlgmr.msra.gmra.mxu1 %vm889_vm5, %v1220_v48  ;;  %v1359_v54 = vadd.f32 %v1691_v51, %v1358_v49 }
 0x55d   : > { %1830 = vmatpush3.bf16.msra.mxu1 %v1914_v47  ;;  %v1827_v52 = vpop.f32.mrf.mxu0  ;;  %1837 = vmatprep.mubr.msk.bf16.mxu1 %vm1997_vm1, %v1996_v0 }
 0x55e   : > { %1831 = vmatprep.subr.bf16.mxu1 %v1996_v0  ;;  %v1364_v57 = vmax.f32 %v1359_v54, 0.0 }
 0x55f   : > { %v1361_v53 = vpop.f32.mrf.mxu0 }
 0x560   : > { %v1365_v59 = vpack.c.bf16 %v1364_v57, %v1364_v57 }
 0x561   : > { %1832 = vmatpush3.bf16.msra.mxu1 %v1915_v50  ;;  %v1828_v56 = vpop.f32.mrf.mxu0 }
 0x562   : > { %1833 = vmatprep.subr.bf16.mxu1 %v1996_v0 }
 0x565   : > { %1834 = vmatpush3.bf16.msra.mxu1 %v1916_v55 }
 0x566   : > { %1835 = vmatprep.subr.bf16.mxu1 %v1996_v0  ;;  %v1694_v0 = vld [vmem:[%s2406_s19] ss:$0 sm:$0xff] }
 0x569   : > { %1836 = vmatpush3.bf16.msra.mxu1 %v1917_v58 }
 0x56c   : > { %1838 = vmatmul.mubr.msk.bf16.vlgmr.msra.gmra.mxu1 %vm889_vm5, %v1365_v59 }
 0x61c   : > { %v1297_v60 = vpop.f32.mrf.mxu1 }
 0x61d   : > { %v1298_v1 = vadd.f32 %v1685_v61, %v1297_v60 }
 0x61e   : > { %v1821_v62 = vpop.f32.mrf.mxu1 }
 0x620   : > { %v1300_v63 = vpop.f32.mrf.mxu1 }
 0x621   : > { %v1301_v2 = vadd.f32 %v1685_v61, %v1300_v63 }
 0x622   : > { %v1822_v3 = vpop.f32.mrf.mxu1 }
 0x623   : > { %v1449_v4 = vpack.c.bf16 %v1301_v2, %v1298_v1 }
 0x625   : > { %v1454_v5 = vsel %vm1320_vm7, %v1449_v4, 0 }
 0x626   : > { %1842 = vmatpush3.bf16.xpose.msra.mxu0 %v1454_v5 }
 0x62c   : > { %v1442_v6 = vpop.f32.mrf.mxu1 }
 0x62d   : > { %v1443_v7 = vadd.f32 %v1694_v0, %v1442_v6 }
 0x62e   : > { %v1839_v8 = vpop.f32.mrf.mxu1 }
 0x62f   : > { %v1448_v9 = vpack.c.bf16 %v1443_v7, %v1443_v7 }
 0x630   : > { %v1445_v10 = vpop.f32.mrf.mxu1 }
 0x631   : > { %1844 = vmatmul.mubr.msk.bf16.vlgmr.msra.gmra.mxu0 %vm1320_vm7, %v1448_v9 }
 0x632   : > { %v1840_v11 = vpop.f32.mrf.mxu1 }
 0x6f1   : > { %v1490_v12 = vpop.f32.mrf.mxu0 }
 0x6f2   : > { %v1701_v13 = vmul.f32 -1.442695, %v1490_v12 }
 0x6f3   : > { %v1845_v14 = vpop.f32.mrf.mxu0 }
 0x6f4   : > { %1926 = vpow2.f32 %v1701_v13 }
 0x6f5   : > { %v1493_v15 = vpop.f32.mrf.mxu0 }
 0x6f7   : > { %v1846_v16 = vpop.f32.mrf.mxu0 }
 0x701   : > { %v1927_v17 = vpop.eup %1926 }
 0x702   : > { %v1499_v18 = vadd.f32 1.0, %v1927_v17 }
 0x704   : > { %1928 = vrcp.f32 %v1499_v18 }
 0x711   : > { %v1929_v19 = vpop.eup %1928 }
 0x712   : > { %1930 = vlog2.f32 %v1929_v19  ;;  %v1505_v20 = vsub.f32 0.0, %v1929_v19 }
 0x714   : > { %v1506_v21 = vadd.f32 1.0, %v1505_v20  ;;  %v1509_v22 = vmul.f32 -0.5, %v1505_v20  ;;  %v1512_v26 = vand.u32 2147483647, %v1505_v20 }
 0x716   : > { %1932 = vlog2.f32 %v1506_v21  ;;  %v1510_v24 = vadd.f32 1.0, %v1509_v22  ;;  %vm1513_vm8 = vcmp.lt.f32.partialorder %v1512_v26, 0.0004427343 }
 0x718   : > { %v1511_v30 = vmul.f32 %v1510_v24, %v1505_v20 }
 0x71f   : > { %v1931_v23 = vpop.eup %1930 }
 0x720   : > { %v1503_v25 = vmul.f32 0.6931472, %v1931_v23 }
 0x722   : > { %v1504_v31 = vmax.f32 %v1503_v25, -100.0 }
 0x723   : > { %v1933_v27 = vpop.eup %1932 }
 0x724   : > { %v1508_v29 = vmul.f32 0.6931472, %v1933_v27  ;;  %v1516_v35 = vmul.f32 %v1504_v31, %v687_v28 }
 0x726   : > { %v1514_v33 = vsel %vm1513_vm8, %v1511_v30, %v1508_v29 }
 0x727   : > { %v1515_v34 = vmax.f32 %v1514_v33, -100.0 }
 0x729   : > { %v1518_v36 = vmul.f32 %v1517_v32, %v1515_v34 }
 0x72b   : > { %v1519_v37 = vadd.f32 %v1518_v36, %v1516_v35 }
 0x72d   : > { %v1520_v38 = vsub.f32 0.0, %v1519_v37 }
 0x72f   : > { %v1522_v39 = vsel %vm1521_vm9, %v1520_v38, 0.0 }
 0x730   : > { %1523 = vadd.xlane.f32.xlu0 %v1522_v39 }
 0x7b9   : > { %v1524_v40 = vpop.xlane.xlu0 %1523 }
 0x7ba   : > { %v1525_v41 = vrot.slane %v1524_v40, 4 }
 0x7bc   : > { %v1526_v42 = vadd.f32 %v1525_v41, %v1524_v40 }
 0x7be   : > { %v1527_v43 = vrot.slane %v1526_v42, 2 }
 0x7c0   : > { %v1528_v44 = vadd.f32 %v1527_v43, %v1526_v42 }
 0x7c2   : > { %v1529_v45 = vrot.slane %v1528_v44, 1 }
 0x7c4   : > { %v1530_v46 = vadd.f32 %v1529_v45, %v1528_v44 }
 0x7c6   : > { %1847 = vpush %v1530_v46 }
 0x7f7   : > { %s1848_s20 = spop %1847 }
 0x7f8   : > { %s1532_s1 = smul.f32 0.016666668, %s1848_s20 }
 0x7fa   : > { %v1533_v47 = vstv %s1532_s1 }
 0x7fb   : > { %1534 = vst [vmem:[%s663_s27] sm:$0xff] %v1533_v47 }
 0x7fc   : > { %1947 = shalt.err (!%p1944_p3)
}
 0x7fd   : > { %s1948_s27 = scalar_lea.hbm %s2352_s3, 128  ;;  %s1952_s6 = scalar_lea.hbm %s2446_s2, 256 }
 0x7fe   : > { %p1949_p4 = scmp.ne.s32.totalorder %s2352_s3, %s1948_s27  ;;  %p1953_p9 = scmp.lt.s32.totalorder %s2352_s3, %s2446_s2 }
 0x7ff   : > { %p1954_p10 = scmp.lt.s32.totalorder %s1952_s6, %s1948_s27 }
 0x800   : > { %p1950_p7 = pnand %p1949_p4, %p2143_p5 }
 0x801   : > { %p1955_p11 = por %p1954_p10, %p1953_p9 }
 0x802   : > { %p1951_p8 = pneg %p1950_p7 }
 0x804   : > { %p1956_p12 = pnand %p1955_p11, %p1951_p8 }
 0x806   : > { %1959 = shalt.err (!%p1956_p12)
}
 0x807   : > { %1849 = dma.vmem_to_hbm [thread:$0]  (%p2143_p5), %s1550_s30, 128, %s2352_s3, %s1536_s4  }
 0x808 PF: > { %s2447_s5 = sld [smem:[#allocation7_spill]] }
 0x809   : > { %s2448_s23 = sld [smem:[#allocation5_spill]] }
 0x80e   : > { %p1855_p13 = scmp.ge.s32.totalorder %s2447_s5, 2 }
 0x80f   : > { %s1561_s25 = sand.u32 1, %s2448_s23  }
 0x810   : > { %p1852_p0 = pnand %p1855_p13, %p2147_p6  ;;  %s1562_s29 = scalar_lea.sflag [#allocation3], %s1561_s25 }
 0x812   : > { %p1853_p1 = pneg %p1852_p0 }
 0x814   : > { %1977 = dma.done.wait (%p1853_p1), %s1562_s29, 128  }
 0x815   : > { %1979 = vsyncadd (%p1853_p1), %s1562_s29, 4294967168  ;;  %s2450_s24 = sld [smem:[#allocation9_spill]]  ;;  %s2453_s1 = smov %s1986_s22 }
 0x816   : > { %s2451_s27 = sld [smem:[#allocation6_spill]] }
 0x817   : > { %s2452_s23 = sld [smem:[#allocation10_spill]] }
 0x81b   : > { %p30_p2 = scmp.ge.s32.totalorder %s2450_s24, 4  }
 0x81c   : > { %s2454_s22 = smov %s2451_s27 }
 0x81d   :  { %32 = sbr.rel (!%p30_p2) target bundleno = 12 (0xc), region = 144 }
 0x822   :  { %1567 = vsyncpa [#allocation3], 1 }
 0x823   :  { %1569 = vsyncpa [#allocation3 + $0x1], 1 }

</bundles_post_ra>
